<compile_context>
chip_gen: v6e
topology: v6e:2x2x1
jax: 0.10.0
libtpu: 0.0.40
codegen_flags: <defaults>
</compile_context>

<pallas_src>
import functools
import math

import jax
import jax.numpy as jnp
import numpy as np
from jax import lax
from jax.experimental import pallas as pl
from jax.experimental.pallas import tpu as pltpu

EPS = 1e-8


def _scan_loss_kernel(anchors_ref, neighbors_ref, out_ref,
                      a_prob_stash, sim_stash, cons_acc, second_acc,
                      mean_a_acc, *, b, n, tb, entropy_weight):
    i = pl.program_id(0)
    num_tiles = pl.num_programs(0)

    @pl.when(i == 0)
    def _init():
        cons_acc[...] = jnp.zeros_like(cons_acc)
        second_acc[...] = jnp.zeros_like(second_acc)
        mean_a_acc[...] = jnp.zeros_like(mean_a_acc)

    row0 = pl.multiple_of(i * tb, 8)
    local_rows = lax.broadcasted_iota(jnp.int32, (tb, 1), 0)
    valid = (local_rows + row0) < b                      # (tb,1) ragged-tile mask

    a = anchors_ref[...].astype(jnp.float32)             # (tb, n)
    p = neighbors_ref[...].astype(jnp.float32)           # (tb, n)

    # softmax along the class (lane) axis; one reciprocal per row.
    a_exp = jnp.exp(a - jnp.max(a, axis=1, keepdims=True))
    a_prob = a_exp * pl.reciprocal(jnp.sum(a_exp, axis=1, keepdims=True),
                                   approx=False)
    p_exp = jnp.exp(p - jnp.max(p, axis=1, keepdims=True))
    p_prob = p_exp * pl.reciprocal(jnp.sum(p_exp, axis=1, keepdims=True),
                                   approx=False)
    a_prob = jnp.where(valid, a_prob, 0.0)               # zero out padded rows

    sim = jnp.sum(a_prob * p_prob, axis=1, keepdims=True)  # (tb, 1)
    log_sim = jnp.log(sim)

    # Running batch reductions (hidden under the next tile's input DMA).
    cons_acc[...] += jnp.sum(
        jnp.where(valid, -jnp.maximum(log_sim, -100.0), 0.0),
        axis=0, keepdims=True)
    second_acc[...] += jnp.sum(
        jnp.where(valid,
                  jnp.maximum(sim, EPS) * jnp.maximum(log_sim, EPS), 0.0),
        axis=0, keepdims=True)
    mean_a_acc[...] += jnp.sum(a_prob, axis=0, keepdims=True)

    # Stash for the third-order term (couples every row to the whole batch).
    a_prob_stash[pl.ds(row0, tb), :] = a_prob
    sim_stash[pl.ds(row0, tb), :] = jnp.where(valid, sim, 0.0)

    @pl.when(i == num_tiles - 1)
    def _finalize():
        inv_b = 1.0 / b
        consistency = cons_acc[...] * inv_b                           # (1,1)
        second = second_acc[...]                                      # (1,1)
        mean_a = jnp.maximum(mean_a_acc[...] * inv_b, EPS)            # (1,n)
        entropy_loss = -jnp.sum(mean_a * jnp.log(mean_a),
                                axis=1, keepdims=True)                # (1,1)
        # (dissim_loss in the PyTorch forward is dead code — never returned.)

        # --- third-order term ---
        # tiled[r, q] = sim[(r*n + q) % b]; row r only sees the circular window
        # of sim starting at (r*n) % b.  There are d = b // gcd(n, b) distinct
        # windows, taken as static sublane slices of a periodic extension of
        # sim; each row selects its window via an iota compare (built in-kernel,
        # no captured constants, no gathers).
        b_pad = a_prob_stash.shape[0]
        ap = a_prob_stash[...]                                        # (b_pad,n)
        g = math.gcd(n, b)
        d = b // g
        k_rep = -(-(b - g + n) // b)          # ceil((b - g + n) / b)
        s_all = sim_stash[...]                                        # (b_pad,1)
        s_b = s_all if b_pad == b else s_all[:b, :]
        sim_ext = (s_b if k_rep == 1
                   else jnp.concatenate([s_b] * k_rep, axis=0))       # (k_rep*b,1)

        rows = lax.broadcasted_iota(jnp.int32, (b_pad, 1), 0)
        row_win = (rows * (n // g)) % d        # window id per row
        row_valid = rows < b

        def win_dot(w_col):
            return jnp.dot(ap, w_col, preferred_element_type=jnp.float32)

        if d <= 128:
            third_ent = jnp.zeros((b_pad, 1), jnp.float32)
            for k in range(d):
                m_col = win_dot(sim_ext[k * g:k * g + n, :])          # (b_pad,1)
                third_ent = jnp.where(row_win == k, m_col, third_ent)
        else:
            # Bounded-compile-size path for many distinct windows.
            # TODO(synk): the gcd(n,b)==1 (d==b) case still does O(b*n*d) MXU
            # work of which only 1/d survives; a per-row gather / two-pass
            # stream would make it O(b*n).
            def body(k, acc):
                w_col = lax.dynamic_slice(sim_ext, (k * g, 0), (n, 1))
                return jnp.where(row_win == k, win_dot(w_col), acc)
            third_ent = lax.fori_loop(0, d, body,
                                      jnp.zeros((b_pad, 1), jnp.float32))

        lg_third = jnp.log(third_ent)
        third_terms = jnp.where(
            row_valid,
            jnp.maximum(third_ent, EPS) * jnp.maximum(lg_third, EPS),
            0.0)
        third = jnp.sum(third_terms, axis=0, keepdims=True) * (1.0 / n)

        third_weight = 0.5 / math.sqrt(n)
        diff_weight = 0.25 / n
        total = (consistency
                 - entropy_weight * entropy_loss
                 + diff_weight * second
                 - third_weight * third)

        # Lane-dense packed output: lanes 0..4 = total, cons, ent, 2nd, 3rd.
        lane = lax.broadcasted_iota(jnp.int32, (1, 128), 1)
        out_ref[...] = (jnp.where(lane == 0, total, 0.0)
                        + jnp.where(lane == 1, consistency, 0.0)
                        + jnp.where(lane == 2, entropy_loss, 0.0)
                        + jnp.where(lane == 3, second, 0.0)
                        + jnp.where(lane == 4, third, 0.0))


def _round_up(x, m):
    return ((x + m - 1) // m) * m


def _pick_batch_tile(b, n, itemsize):
    """Rows per tile: ~1 MiB of input per tile, multiple of 8, capped by b."""
    target_bytes = 1 << 20
    rows = max(8, target_bytes // max(1, n * itemsize))
    # also bound the in-kernel f32 working set (~8 tile-sized f32 temporaries)
    rows = min(rows, max(8, (4 << 20) // max(1, n * 4)))
    rows = _round_up(rows, 8)
    return min(rows, _round_up(b, 8))


def _vmem_limit_bytes(b_pad, tb, n, in_itemsize):
    lane_n_f32 = _round_up(n, 128) * 4
    stash = b_pad * lane_n_f32                       # a_prob stash
    sim = b_pad * 128 * 4                            # sim column stash
    accs = 2 * 8 * 128 * 4 + 8 * lane_n_f32          # scalar + mean_a accumulators
    inputs = 2 * 2 * tb * _round_up(n, 128) * in_itemsize   # 2 arrays, dbl-buffered
    temps = 8 * tb * lane_n_f32                      # in-kernel f32 temporaries
    out = 2 * 8 * 128 * 4
    need = stash + sim + accs + inputs + temps + out
    if need > (96 << 20):
        # TODO(synk): switch to the two-pass (stream sim, re-stream anchors)
        # structure so VMEM stays O(tile) for very large batch*num_classes.
        raise ValueError(
            f"SCANLoss pallas kernel needs ~{need >> 20} MiB of VMEM; "
            "batch*num_classes too large for the single-pass stash kernel.")
    return int(min(max(need + (8 << 20), 32 << 20), 100 << 20))


def scan_loss(anchors, neighbors, entropy_weight=2.0, block_rows=None):
    assert anchors.ndim == 2 and anchors.shape == neighbors.shape
    b, n = anchors.shape
    itemsize = jnp.dtype(anchors.dtype).itemsize
    tb = _pick_batch_tile(b, n, itemsize) if block_rows is None else block_rows
    assert tb % 8 == 0, "block_rows must be a multiple of 8"
    num_tiles = pl.cdiv(b, tb)
    b_pad = num_tiles * tb

    kernel = functools.partial(_scan_loss_kernel, b=b, n=n, tb=tb,
                               entropy_weight=float(entropy_weight))
    out = pl.pallas_call(
        kernel,
        out_shape=jax.ShapeDtypeStruct((1, 128), jnp.float32),
        grid_spec=pltpu.PrefetchScalarGridSpec(
            num_scalar_prefetch=0,
            grid=(num_tiles,),
            in_specs=[pl.BlockSpec((tb, n), lambda i: (i, 0)),
                      pl.BlockSpec((tb, n), lambda i: (i, 0))],
            out_specs=pl.BlockSpec((1, 128), lambda i: (0, 0)),
            scratch_shapes=[pltpu.VMEM((b_pad, n), jnp.float32),  # a_prob stash
                            pltpu.VMEM((b_pad, 1), jnp.float32),  # sim stash
                            pltpu.VMEM((1, 1), jnp.float32),      # consistency sum
                            pltpu.VMEM((1, 1), jnp.float32),      # second-order sum
                            pltpu.VMEM((1, n), jnp.float32)],     # mean-prob sum
        ),
        compiler_params=pltpu.CompilerParams(
            dimension_semantics=("arbitrary",),
            vmem_limit_bytes=_vmem_limit_bytes(b_pad, tb, n, itemsize)),
    )(anchors, neighbors)   # native dtype; f32 upcast happens in-kernel
    return out[0, 0], out[0, 1], out[0, 2], out[0, 3], out[0, 4]


def _scan_loss_ref(anchors, neighbors, entropy_weight=2.0):
    """Pure-JAX reference (mirrors the PyTorch forward exactly)."""
    b, n = anchors.shape
    a_prob = jax.nn.softmax(anchors.astype(jnp.float32), axis=1)
    p_prob = jax.nn.softmax(neighbors.astype(jnp.float32), axis=1)
    sim = jnp.sum(a_prob * p_prob, axis=1)                            # (b,)
    consistency = jnp.mean(-jnp.maximum(jnp.log(sim), -100.0))
    mean_a = jnp.maximum(jnp.mean(a_prob, axis=0), EPS)
    entropy_loss = -jnp.sum(mean_a * jnp.log(mean_a))
    second = jnp.sum(jnp.maximum(sim, EPS) * jnp.maximum(jnp.log(sim), EPS))
    tiled = jnp.reshape(jnp.tile(sim, n), (b, n))   # row-major == view(b,n,1)
    third_ent = jnp.sum(a_prob * tiled, axis=1)
    third = jnp.sum(jnp.maximum(third_ent, EPS) *
                    jnp.maximum(jnp.log(third_ent), EPS)) / n
    total = (consistency - entropy_weight * entropy_loss
             + (0.25 / n) * second - (0.5 / np.sqrt(n)) * third)
    return total, consistency, entropy_loss, second, third


if __name__ == "__main__":
    key = jax.random.PRNGKey(0)

    # config 1: [batch, num_classes] = [8, 16]  -> single tile, d == 1
    # config 2: [32, 24] with a forced 24-row tile -> ragged last tile,
    #           multi-tile accumulation and d = 4 distinct circular windows.
    configs = [((8, 16), None), ((32, 24), 24)]
    for (b, n), block_rows in configs:
        key, k1, k2 = jax.random.split(key, 3)
        anchors = jax.random.normal(k1, (b, n), dtype=jnp.float32)
        neighbors = jax.random.normal(k2, (b, n), dtype=jnp.float32)

        outs = scan_loss(anchors, neighbors, entropy_weight=2.0,
                         block_rows=block_rows)
        outs = jax.block_until_ready(outs)

        refs = _scan_loss_ref(anchors, neighbors, entropy_weight=2.0)
        for o, r in zip(outs, refs):
            np.testing.assert_allclose(np.asarray(o), np.asarray(r),
                                       rtol=2e-4, atol=1e-5)
    print("KERNEL_OK")
</pallas_src>

<mosaic_0001>
module attributes {stable_mosaic.version = 11 : i64} {
  func.func @_scan_loss_kernel(%arg0: i32, %arg1: memref<8x16xf32, #tpu.memory_space<vmem>>, %arg2: memref<8x16xf32, #tpu.memory_space<vmem>>, %arg3: memref<1x128xf32, #tpu.memory_space<vmem>>, %arg4: memref<8x16xf32, #tpu.memory_space<vmem>>, %arg5: memref<8x1xf32, #tpu.memory_space<vmem>>, %arg6: memref<1x1xf32, #tpu.memory_space<vmem>>, %arg7: memref<1x1xf32, #tpu.memory_space<vmem>>, %arg8: memref<1x16xf32, #tpu.memory_space<vmem>>) attributes {dimension_semantics = [#tpu.dimension_semantics<arbitrary>], iteration_bounds = array<i64: 1>, scalar_prefetch = 0 : i64, scratch_operands = 5 : i64, tpu.core_type = #tpu.core_type<tc>, window_params = [{transform_indices = @transform_0, window_bounds = array<i64: 8, 16>}, {transform_indices = @transform_1, window_bounds = array<i64: 8, 16>}, {pipeline_mode = #tpu.pipeline_mode<synchronous>, transform_indices = @transform_2, window_bounds = array<i64: 1, 128>}]} {
    %c0_i32 = arith.constant 0 : i32
    %0 = arith.cmpi eq, %arg0, %c0_i32 : i32
    %1 = arith.extui %0 : i1 to i32
    %c0_i32_0 = arith.constant 0 : i32
    %2 = arith.cmpi ne, %1, %c0_i32_0 : i32
    scf.if %2 {
      %cst_36 = arith.constant 0.000000e+00 : f32
      %77 = vector.broadcast %cst_36 : f32 to vector<1x1xf32>
      %c0_37 = arith.constant 0 : index
      %c0_38 = arith.constant 0 : index
      %78 = vector.load %arg6[%c0_37, %c0_38] : memref<1x1xf32, #tpu.memory_space<vmem>>, vector<1x1xf32>
      tpu.vector_store %arg6[%c0_37, %c0_38], %77 {strides = array<i32>} : memref<1x1xf32, #tpu.memory_space<vmem>>, vector<1x1xf32>,
      %cst_39 = arith.constant 0.000000e+00 : f32
      %79 = vector.broadcast %cst_39 : f32 to vector<1x1xf32>
      %c0_40 = arith.constant 0 : index
      %c0_41 = arith.constant 0 : index
      %80 = vector.load %arg7[%c0_40, %c0_41] : memref<1x1xf32, #tpu.memory_space<vmem>>, vector<1x1xf32>
      tpu.vector_store %arg7[%c0_40, %c0_41], %79 {strides = array<i32>} : memref<1x1xf32, #tpu.memory_space<vmem>>, vector<1x1xf32>,
      %cst_42 = arith.constant 0.000000e+00 : f32
      %81 = vector.broadcast %cst_42 : f32 to vector<1x16xf32>
      %c0_43 = arith.constant 0 : index
      %c0_44 = arith.constant 0 : index
      %82 = vector.load %arg8[%c0_43, %c0_44] : memref<1x16xf32, #tpu.memory_space<vmem>>, vector<1x16xf32>
      tpu.vector_store %arg8[%c0_43, %c0_44], %81 {strides = array<i32>} : memref<1x16xf32, #tpu.memory_space<vmem>>, vector<1x16xf32>,
    } else {
    }
    %c8_i32 = arith.constant 8 : i32
    %3 = arith.muli %arg0, %c8_i32 : i32
    %4 = tpu.assume_multiple %3, 8 : i32
    %5 = tpu.iota {dimensions = array<i32: 0>} : vector<8x1xi32>
    %6 = vector.broadcast %4 : i32 to vector<8x1xi32>
    %7 = arith.addi %5, %6 : vector<8x1xi32>
    %c8_i32_1 = arith.constant 8 : i32
    %8 = vector.broadcast %c8_i32_1 : i32 to vector<8x1xi32>
    %9 = arith.cmpi slt, %7, %8 : vector<8x1xi32>
    %c0 = arith.constant 0 : index
    %c0_2 = arith.constant 0 : index
    %10 = vector.load %arg1[%c0, %c0_2] : memref<8x16xf32, #tpu.memory_space<vmem>>, vector<8x16xf32>
    %c0_3 = arith.constant 0 : index
    %c0_4 = arith.constant 0 : index
    %11 = vector.load %arg2[%c0_3, %c0_4] : memref<8x16xf32, #tpu.memory_space<vmem>>, vector<8x16xf32>
    %cst = arith.constant dense<0xFF800000> : vector<8xf32>
    %12 = vector.multi_reduction <maximumf>, %10, %cst [1] : vector<8x16xf32> to vector<8xf32>
    %13 = vector.shape_cast %12 : vector<8xf32> to vector<8x1xf32>
    %14 = vector.broadcast %13 : vector<8x1xf32> to vector<8x16xf32>
    %15 = arith.subf %10, %14 : vector<8x16xf32>
    %16 = math.exp %15 : vector<8x16xf32>
    %cst_5 = arith.constant dense<0.000000e+00> : vector<8xf32>
    %17 = vector.multi_reduction <add>, %16, %cst_5 [1] : vector<8x16xf32> to vector<8xf32>
    %18 = vector.shape_cast %17 : vector<8xf32> to vector<8x1xf32>
    %19 = tpu.reciprocal %18 : vector<8x1xf32> -> vector<8x1xf32>
    %20 = vector.broadcast %19 : vector<8x1xf32> to vector<8x16xf32>
    %21 = arith.mulf %16, %20 : vector<8x16xf32>
    %cst_6 = arith.constant dense<0xFF800000> : vector<8xf32>
    %22 = vector.multi_reduction <maximumf>, %11, %cst_6 [1] : vector<8x16xf32> to vector<8xf32>
    %23 = vector.shape_cast %22 : vector<8xf32> to vector<8x1xf32>
    %24 = vector.broadcast %23 : vector<8x1xf32> to vector<8x16xf32>
    %25 = arith.subf %11, %24 : vector<8x16xf32>
    %26 = math.exp %25 : vector<8x16xf32>
    %cst_7 = arith.constant dense<0.000000e+00> : vector<8xf32>
    %27 = vector.multi_reduction <add>, %26, %cst_7 [1] : vector<8x16xf32> to vector<8xf32>
    %28 = vector.shape_cast %27 : vector<8xf32> to vector<8x1xf32>
    %29 = tpu.reciprocal %28 : vector<8x1xf32> -> vector<8x1xf32>
    %30 = vector.broadcast %29 : vector<8x1xf32> to vector<8x16xf32>
    %31 = arith.mulf %26, %30 : vector<8x16xf32>
    %cst_8 = arith.constant 0.000000e+00 : f32
    %32 = vector.shape_cast %9 : vector<8x1xi1> to vector<8x1xi1>
    %33 = vector.broadcast %32 : vector<8x1xi1> to vector<8x16xi1>
    %34 = vector.broadcast %cst_8 : f32 to vector<8x16xf32>
    %35 = arith.select %33, %21, %34 : vector<8x16xi1>, vector<8x16xf32>
    %36 = arith.mulf %35, %31 : vector<8x16xf32>
    %cst_9 = arith.constant dense<0.000000e+00> : vector<8xf32>
    %37 = vector.multi_reduction <add>, %36, %cst_9 [1] : vector<8x16xf32> to vector<8xf32>
    %38 = vector.shape_cast %37 : vector<8xf32> to vector<8x1xf32>
    %39 = math.log %38 : vector<8x1xf32>
    %c0_10 = arith.constant 0 : index
    %c0_11 = arith.constant 0 : index
    %40 = vector.load %arg6[%c0_10, %c0_11] : memref<1x1xf32, #tpu.memory_space<vmem>>, vector<1x1xf32>
    %cst_12 = arith.constant -1.000000e+02 : f32
    %41 = vector.broadcast %cst_12 : f32 to vector<8x1xf32>
    %42 = arith.maximumf %39, %41 : vector<8x1xf32>
    %cst_13 = arith.constant 0.000000e+00 : f32
    %43 = vector.broadcast %cst_13 : f32 to vector<8x1xf32>
    %44 = arith.subf %43, %42 : vector<8x1xf32>
    %cst_14 = arith.constant 0.000000e+00 : f32
    %45 = vector.broadcast %cst_14 : f32 to vector<8x1xf32>
    %46 = arith.select %9, %44, %45 : vector<8x1xi1>, vector<8x1xf32>
    %cst_15 = arith.constant dense<0.000000e+00> : vector<1xf32>
    %47 = vector.multi_reduction <add>, %46, %cst_15 [0] : vector<8x1xf32> to vector<1xf32>
    %48 = vector.shape_cast %47 : vector<1xf32> to vector<1x1xf32>
    %49 = arith.addf %40, %48 : vector<1x1xf32>
    %c0_16 = arith.constant 0 : index
    %c0_17 = arith.constant 0 : index
    %50 = vector.load %arg6[%c0_16, %c0_17] : memref<1x1xf32, #tpu.memory_space<vmem>>, vector<1x1xf32>
    tpu.vector_store %arg6[%c0_16, %c0_17], %49 {strides = array<i32>} : memref<1x1xf32, #tpu.memory_space<vmem>>, vector<1x1xf32>,
    %c0_18 = arith.constant 0 : index
    %c0_19 = arith.constant 0 : index
    %51 = vector.load %arg7[%c0_18, %c0_19] : memref<1x1xf32, #tpu.memory_space<vmem>>, vector<1x1xf32>
    %cst_20 = arith.constant 9.99999993E-9 : f32
    %52 = vector.broadcast %cst_20 : f32 to vector<8x1xf32>
    %53 = arith.maximumf %38, %52 : vector<8x1xf32>
    %cst_21 = arith.constant 9.99999993E-9 : f32
    %54 = vector.broadcast %cst_21 : f32 to vector<8x1xf32>
    %55 = arith.maximumf %39, %54 : vector<8x1xf32>
    %56 = arith.mulf %53, %55 : vector<8x1xf32>
    %cst_22 = arith.constant 0.000000e+00 : f32
    %57 = vector.broadcast %cst_22 : f32 to vector<8x1xf32>
    %58 = arith.select %9, %56, %57 : vector<8x1xi1>, vector<8x1xf32>
    %cst_23 = arith.constant dense<0.000000e+00> : vector<1xf32>
    %59 = vector.multi_reduction <add>, %58, %cst_23 [0] : vector<8x1xf32> to vector<1xf32>
    %60 = vector.shape_cast %59 : vector<1xf32> to vector<1x1xf32>
    %61 = arith.addf %51, %60 : vector<1x1xf32>
    %c0_24 = arith.constant 0 : index
    %c0_25 = arith.constant 0 : index
    %62 = vector.load %arg7[%c0_24, %c0_25] : memref<1x1xf32, #tpu.memory_space<vmem>>, vector<1x1xf32>
    tpu.vector_store %arg7[%c0_24, %c0_25], %61 {strides = array<i32>} : memref<1x1xf32, #tpu.memory_space<vmem>>, vector<1x1xf32>,
    %c0_26 = arith.constant 0 : index
    %c0_27 = arith.constant 0 : index
    %63 = vector.load %arg8[%c0_26, %c0_27] : memref<1x16xf32, #tpu.memory_space<vmem>>, vector<1x16xf32>
    %cst_28 = arith.constant dense<0.000000e+00> : vector<16xf32>
    %64 = vector.multi_reduction <add>, %35, %cst_28 [0] : vector<8x16xf32> to vector<16xf32>
    %65 = vector.shape_cast %64 : vector<16xf32> to vector<1x16xf32>
    %66 = arith.addf %63, %65 : vector<1x16xf32>
    %c0_29 = arith.constant 0 : index
    %c0_30 = arith.constant 0 : index
    %67 = vector.load %arg8[%c0_29, %c0_30] : memref<1x16xf32, #tpu.memory_space<vmem>>, vector<1x16xf32>
    tpu.vector_store %arg8[%c0_29, %c0_30], %66 {strides = array<i32>} : memref<1x16xf32, #tpu.memory_space<vmem>>, vector<1x16xf32>,
    %68 = arith.index_cast %4 : i32 to index
    %c0_31 = arith.constant 0 : index
    %69 = vector.load %arg4[%68, %c0_31] : memref<8x16xf32, #tpu.memory_space<vmem>>, vector<8x16xf32>
    tpu.vector_store %arg4[%68, %c0_31], %35 {strides = array<i32>} : memref<8x16xf32, #tpu.memory_space<vmem>>, vector<8x16xf32>,
    %cst_32 = arith.constant 0.000000e+00 : f32
    %70 = vector.broadcast %cst_32 : f32 to vector<8x1xf32>
    %71 = arith.select %9, %38, %70 : vector<8x1xi1>, vector<8x1xf32>
    %72 = arith.index_cast %4 : i32 to index
    %c0_33 = arith.constant 0 : index
    %73 = vector.load %arg5[%72, %c0_33] : memref<8x1xf32, #tpu.memory_space<vmem>>, vector<8x1xf32>
    tpu.vector_store %arg5[%72, %c0_33], %71 {strides = array<i32>} : memref<8x1xf32, #tpu.memory_space<vmem>>, vector<8x1xf32>,
    %c0_i32_34 = arith.constant 0 : i32
    %74 = arith.cmpi eq, %arg0, %c0_i32_34 : i32
    %75 = arith.extui %74 : i1 to i32
    %c0_i32_35 = arith.constant 0 : i32
    %76 = arith.cmpi ne, %75, %c0_i32_35 : i32
    scf.if %76 {
      %c0_36 = arith.constant 0 : index
      %c0_37 = arith.constant 0 : index
      %77 = vector.load %arg6[%c0_36, %c0_37] : memref<1x1xf32, #tpu.memory_space<vmem>>, vector<1x1xf32>
      %cst_38 = arith.constant 1.250000e-01 : f32
      %78 = vector.broadcast %cst_38 : f32 to vector<1x1xf32>
      %79 = arith.mulf %77, %78 : vector<1x1xf32>
      %c0_39 = arith.constant 0 : index
      %c0_40 = arith.constant 0 : index
      %80 = vector.load %arg7[%c0_39, %c0_40] : memref<1x1xf32, #tpu.memory_space<vmem>>, vector<1x1xf32>
      %c0_41 = arith.constant 0 : index
      %c0_42 = arith.constant 0 : index
      %81 = vector.load %arg8[%c0_41, %c0_42] : memref<1x16xf32, #tpu.memory_space<vmem>>, vector<1x16xf32>
      %cst_43 = arith.constant 1.250000e-01 : f32
      %82 = vector.broadcast %cst_43 : f32 to vector<1x16xf32>
      %83 = arith.mulf %81, %82 : vector<1x16xf32>
      %cst_44 = arith.constant 9.99999993E-9 : f32
      %84 = vector.broadcast %cst_44 : f32 to vector<1x16xf32>
      %85 = arith.maximumf %83, %84 : vector<1x16xf32>
      %86 = math.log %85 : vector<1x16xf32>
      %87 = arith.mulf %85, %86 : vector<1x16xf32>
      %cst_45 = arith.constant dense<0.000000e+00> : vector<1xf32>
      %88 = vector.multi_reduction <add>, %87, %cst_45 [1] : vector<1x16xf32> to vector<1xf32>
      %89 = vector.shape_cast %88 : vector<1xf32> to vector<1x1xf32>
      %cst_46 = arith.constant 0.000000e+00 : f32
      %90 = vector.broadcast %cst_46 : f32 to vector<1x1xf32>
      %91 = arith.subf %90, %89 : vector<1x1xf32>
      %c0_47 = arith.constant 0 : index
      %c0_48 = arith.constant 0 : index
      %92 = vector.load %arg4[%c0_47, %c0_48] : memref<8x16xf32, #tpu.memory_space<vmem>>, vector<8x16xf32>
      %c0_49 = arith.constant 0 : index
      %c0_50 = arith.constant 0 : index
      %93 = vector.load %arg5[%c0_49, %c0_50] : memref<8x1xf32, #tpu.memory_space<vmem>>, vector<8x1xf32>
      %94 = tpu.concatenate %93, %93 in 0 : vector<8x1xf32>, vector<8x1xf32> -> vector<16x1xf32>
      %95 = tpu.iota {dimensions = array<i32: 0>} : vector<8x1xi32>
      %c2_i32 = arith.constant 2 : i32
      %96 = vector.broadcast %c2_i32 : i32 to vector<8x1xi32>
      %97 = arith.muli %95, %96 : vector<8x1xi32>
      %c1_i32 = arith.constant 1 : i32
      %c0_i32_51 = arith.constant 0 : i32
      %98 = arith.cmpi eq, %c1_i32, %c0_i32_51 : i32
      %c1_i32_52 = arith.constant 1 : i32
      %99 = arith.select %98, %c1_i32_52, %c1_i32 : i32
      %100 = vector.broadcast %99 : i32 to vector<8x1xi32>
      %101 = arith.remsi %97, %100 : vector<8x1xi32>
      %c0_i32_53 = arith.constant 0 : i32
      %102 = vector.broadcast %c0_i32_53 : i32 to vector<8x1xi32>
      %103 = arith.cmpi ne, %101, %102 : vector<8x1xi32>
      %c0_i32_54 = arith.constant 0 : i32
      %104 = vector.broadcast %c0_i32_54 : i32 to vector<8x1xi32>
      %105 = arith.cmpi slt, %101, %104 : vector<8x1xi32>
      %c0_i32_55 = arith.constant 0 : i32
      %106 = arith.cmpi slt, %99, %c0_i32_55 : i32
      %107 = vector.broadcast %106 : i1 to vector<8x1xi1>
      %108 = vector.broadcast %107 : vector<8x1xi1> to vector<8x1xi1>
      %109 = arith.xori %105, %108 : vector<8x1xi1>
      %110 = arith.andi %109, %103 : vector<8x1xi1>
      %111 = vector.broadcast %99 : i32 to vector<8x1xi32>
      %112 = arith.addi %101, %111 : vector<8x1xi32>
      %113 = arith.select %110, %112, %101 : vector<8x1xi1>, vector<8x1xi32>
      %c8_i32_56 = arith.constant 8 : i32
      %114 = vector.broadcast %c8_i32_56 : i32 to vector<8x1xi32>
      %115 = arith.cmpi slt, %95, %114 : vector<8x1xi32>
      %cst_57 = arith.constant 0.000000e+00 : f32
      %116 = vector.broadcast %cst_57 : f32 to vector<8x1xf32>
      %cst_58 = arith.constant dense<0.000000e+00> : vector<8x1xf32>
      %117 = tpu.matmul %92, %94, %cst_58 {dimension_numbers = #tpu.dot_dimension_numbers<[1], [0], [0], [1], [0, 0, 1, 1], [], []>} : vector<8x16xf32>, vector<16x1xf32>, vector<8x1xf32> -> vector<8x1xf32>
      %c0_i32_59 = arith.constant 0 : i32
      %118 = vector.broadcast %c0_i32_59 : i32 to vector<8x1xi32>
      %119 = arith.cmpi eq, %113, %118 : vector<8x1xi32>
      %120 = arith.select %119, %117, %116 : vector<8x1xi1>, vector<8x1xf32>
      %121 = math.log %120 : vector<8x1xf32>
      %cst_60 = arith.constant 9.99999993E-9 : f32
      %122 = vector.broadcast %cst_60 : f32 to vector<8x1xf32>
      %123 = arith.maximumf %120, %122 : vector<8x1xf32>
      %cst_61 = arith.constant 9.99999993E-9 : f32
      %124 = vector.broadcast %cst_61 : f32 to vector<8x1xf32>
      %125 = arith.maximumf %121, %124 : vector<8x1xf32>
      %126 = arith.mulf %123, %125 : vector<8x1xf32>
      %cst_62 = arith.constant 0.000000e+00 : f32
      %127 = vector.broadcast %cst_62 : f32 to vector<8x1xf32>
      %128 = arith.select %115, %126, %127 : vector<8x1xi1>, vector<8x1xf32>
      %cst_63 = arith.constant dense<0.000000e+00> : vector<1xf32>
      %129 = vector.multi_reduction <add>, %128, %cst_63 [0] : vector<8x1xf32> to vector<1xf32>
      %130 = vector.shape_cast %129 : vector<1xf32> to vector<1x1xf32>
      %cst_64 = arith.constant 6.250000e-02 : f32
      %131 = vector.broadcast %cst_64 : f32 to vector<1x1xf32>
      %132 = arith.mulf %130, %131 : vector<1x1xf32>
      %cst_65 = arith.constant 2.000000e+00 : f32
      %133 = vector.broadcast %cst_65 : f32 to vector<1x1xf32>
      %134 = arith.mulf %133, %91 : vector<1x1xf32>
      %135 = arith.subf %79, %134 : vector<1x1xf32>
      %cst_66 = arith.constant 1.562500e-02 : f32
      %136 = vector.broadcast %cst_66 : f32 to vector<1x1xf32>
      %137 = arith.mulf %136, %80 : vector<1x1xf32>
      %138 = arith.addf %135, %137 : vector<1x1xf32>
      %cst_67 = arith.constant 1.250000e-01 : f32
      %139 = vector.broadcast %cst_67 : f32 to vector<1x1xf32>
      %140 = arith.mulf %139, %132 : vector<1x1xf32>
      %141 = arith.subf %138, %140 : vector<1x1xf32>
      %142 = tpu.iota {dimensions = array<i32: 1>} : vector<1x128xi32>
      %c0_i32_68 = arith.constant 0 : i32
      %143 = vector.broadcast %c0_i32_68 : i32 to vector<1x128xi32>
      %144 = arith.cmpi eq, %142, %143 : vector<1x128xi32>
      %cst_69 = arith.constant 0.000000e+00 : f32
      %145 = vector.shape_cast %141 : vector<1x1xf32> to vector<1x1xf32>
      %146 = vector.broadcast %145 : vector<1x1xf32> to vector<1x128xf32>
      %147 = vector.broadcast %cst_69 : f32 to vector<1x128xf32>
      %148 = arith.select %144, %146, %147 : vector<1x128xi1>, vector<1x128xf32>
      %c1_i32_70 = arith.constant 1 : i32
      %149 = vector.broadcast %c1_i32_70 : i32 to vector<1x128xi32>
      %150 = arith.cmpi eq, %142, %149 : vector<1x128xi32>
      %cst_71 = arith.constant 0.000000e+00 : f32
      %151 = vector.shape_cast %79 : vector<1x1xf32> to vector<1x1xf32>
      %152 = vector.broadcast %151 : vector<1x1xf32> to vector<1x128xf32>
      %153 = vector.broadcast %cst_71 : f32 to vector<1x128xf32>
      %154 = arith.select %150, %152, %153 : vector<1x128xi1>, vector<1x128xf32>
      %155 = arith.addf %148, %154 : vector<1x128xf32>
      %c2_i32_72 = arith.constant 2 : i32
      %156 = vector.broadcast %c2_i32_72 : i32 to vector<1x128xi32>
      %157 = arith.cmpi eq, %142, %156 : vector<1x128xi32>
      %cst_73 = arith.constant 0.000000e+00 : f32
      %158 = vector.shape_cast %91 : vector<1x1xf32> to vector<1x1xf32>
      %159 = vector.broadcast %158 : vector<1x1xf32> to vector<1x128xf32>
      %160 = vector.broadcast %cst_73 : f32 to vector<1x128xf32>
      %161 = arith.select %157, %159, %160 : vector<1x128xi1>, vector<1x128xf32>
      %162 = arith.addf %155, %161 : vector<1x128xf32>
      %c3_i32 = arith.constant 3 : i32
      %163 = vector.broadcast %c3_i32 : i32 to vector<1x128xi32>
      %164 = arith.cmpi eq, %142, %163 : vector<1x128xi32>
      %cst_74 = arith.constant 0.000000e+00 : f32
      %165 = vector.shape_cast %80 : vector<1x1xf32> to vector<1x1xf32>
      %166 = vector.broadcast %165 : vector<1x1xf32> to vector<1x128xf32>
      %167 = vector.broadcast %cst_74 : f32 to vector<1x128xf32>
      %168 = arith.select %164, %166, %167 : vector<1x128xi1>, vector<1x128xf32>
      %169 = arith.addf %162, %168 : vector<1x128xf32>
      %c4_i32 = arith.constant 4 : i32
      %170 = vector.broadcast %c4_i32 : i32 to vector<1x128xi32>
      %171 = arith.cmpi eq, %142, %170 : vector<1x128xi32>
      %cst_75 = arith.constant 0.000000e+00 : f32
      %172 = vector.shape_cast %132 : vector<1x1xf32> to vector<1x1xf32>
      %173 = vector.broadcast %172 : vector<1x1xf32> to vector<1x128xf32>
      %174 = vector.broadcast %cst_75 : f32 to vector<1x128xf32>
      %175 = arith.select %171, %173, %174 : vector<1x128xi1>, vector<1x128xf32>
      %176 = arith.addf %169, %175 : vector<1x128xf32>
      %c0_76 = arith.constant 0 : index
      %c0_77 = arith.constant 0 : index
      %177 = vector.load %arg3[%c0_76, %c0_77] : memref<1x128xf32, #tpu.memory_space<vmem>>, vector<1x128xf32>
      tpu.vector_store %arg3[%c0_76, %c0_77], %176 {strides = array<i32>} : memref<1x128xf32, #tpu.memory_space<vmem>>, vector<1x128xf32>,
    } else {
    }
    return
  }
  func.func @transform_0(%arg0: i32) -> (i32, i32) {
    %c0_i32 = arith.constant 0 : i32
    %c0_i32_0 = arith.constant 0 : i32
    return %arg0, %c0_i32 : i32, i32
  }
  func.func @transform_1(%arg0: i32) -> (i32, i32) {
    %c0_i32 = arith.constant 0 : i32
    %c0_i32_0 = arith.constant 0 : i32
    return %arg0, %c0_i32 : i32, i32
  }
  func.func @transform_2(%arg0: i32) -> (i32, i32) {
    %c0_i32 = arith.constant 0 : i32
    %c0_i32_0 = arith.constant 0 : i32
    %c0_i32_1 = arith.constant 0 : i32
    return %c0_i32, %c0_i32_0 : i32, i32
  }
}

</mosaic_0001>

<bundles_post_ra>
// kernel: tpu_custom_call.1
= control target key start
LH: loop header
LB: loop body
LE: loop exit
PB: predicated region body
PF: predicated region fallthrough
CT: control target
= control target key end

     0   :  { %7 = vsyncpa [#allocation8], 0  ;;  %s451_s0 = inlined_call_operand.hbm [shape: f32[8,16], index: 0, kind: input, shape index: {}]   ;;  %s452_s1 = inlined_call_operand.hbm [shape: f32[8,16], index: 1, kind: input, shape index: {}]   ;;  %s453_s2 = inlined_call_operand.hbm [shape: f32[1,128], index: 2, kind: output, shape index: {}]  }
   0x1   :  { %8 = vsyncpa [#allocation11], 0 }
   0x2   :  { %9 = vsyncpa [#allocation9], 0  ;;  %s404_s9 = smov [#allocation7]   ;;  %s405_s11 = smov [#allocation10]  }
   0x3   :  { %s16_s10 = sshll.u32 %s404_s9, 4  ;;  %s26_s12 = sshll.u32 %s405_s11, 4  ;;  %s17_s10 = int_to_ptr.vmem [resolvable:$true] %s16_s10  ;;  %s27_s12 = int_to_ptr.vmem [resolvable:$true] %s26_s12 }
   0x4   :  { %s346_s13 = scalar_lea.vmem %s17_s10, 128  ;;  %p351_p1 = scmp.lt.s32.totalorder %s17_s10, %s17_s10 }
   0x5   :  { %p347_p0 = scmp.ne.s32.totalorder %s17_s10, %s346_s13  ;;  %p352_p2 = scmp.lt.s32.totalorder %s346_s13, %s346_s13 }
   0x7   :  { %p353_p3 = por %p352_p2, %p351_p1 }
   0x9   :  { %p354_p4 = pnand %p353_p3, %p347_p0 }
   0xb   :  { %357 = shalt.err (!%p354_p4)
}
   0xc   :  { %19 = dma.hbm_to_vmem [thread:$0]  %s451_s0, 128, %s17_s10, [#allocation8]  }
   0xd   :  { %s366_s16 = scalar_lea.vmem %s27_s12, 128  ;;  %p371_p6 = scmp.lt.s32.totalorder %s27_s12, %s27_s12 }
   0xe   :  { %p367_p5 = scmp.ne.s32.totalorder %s27_s12, %s366_s16  ;;  %p372_p7 = scmp.lt.s32.totalorder %s366_s16, %s366_s16 }
  0x10   :  { %p373_p8 = por %p372_p7, %p371_p6 }
  0x12   :  { %p374_p9 = pnand %p373_p8, %p367_p5 }
  0x14   :  { %377 = shalt.err (!%p374_p9)
}
  0x15   :  { %29 = dma.hbm_to_vmem [thread:$0]  %s452_s1, 128, %s27_s12, [#allocation11]  }
  0x16   :  { %398 = dma.done.wait [#allocation8], 128  }
  0x17   :  { %399 = vsyncadd [#allocation8], 4294967168 }
  0x18   :  { %400 = dma.done.wait [#allocation11], 128  }
  0x19   :  { %401 = vsyncadd [#allocation11], 4294967168  ;;  %vm53_vm0 = vcmask 130048   ;;  %v51_v0 = vld [vmem:[#allocation7] sm:$0xff]  ;;  %v52_v1 = vld [vmem:[#allocation10] sm:$0xff]  ;;  %vm43_vm1 = vcmask 122880  }
  0x1a   :  { %v54_v2 = vsel %vm53_vm0, %v51_v0, -inf  ;;  %v65_v3 = vsel %vm53_vm0, %v52_v1, -inf  ;;  %v406_v14 = vmov 0.0   ;;  %vm40_vm2 = vcmask 0   ;;  %s409_s0 = smov [#allocation12]  }
  0x1b   :  { %55 = vmax.xlane.f32.xlu0 %v54_v2  ;;  %44 = vst.msk [vmem:[#allocation6] sm:$0x1] %vm43_vm1, %v406_v14  ;;  %309 = vmatprep.subr.mxu0 %v406_v14  ;;  %vm407_vm3 = vmmov 0   ;;  %v408_v39 = vmov 0   ;;  %vm126_vm4 = vcmask 7168   ;;  %s295_s1 = sshll.u32 %s409_s0, 4  ;;  %s296_s1 = int_to_ptr.vmem [resolvable:$true] %s295_s1 }
  0x1c   :  { %41 = vst.msk [vmem:[#allocation4] sm:$0x1] %vm40_vm2, %v406_v14  ;;  %42 = vst.msk [vmem:[#allocation5] sm:$0x1] %vm40_vm2, %v406_v14  ;;  %313 = vmatprep.mubr.msk.f32.mxu0 %vm407_vm3, %v406_v14  ;;  %323 = vset.pattern.permute.xlu1 %v408_v39  ;;  %s378_s19 = scalar_lea.vmem %s296_s1, 16  ;;  %s382_s20 = scalar_lea.vmem %s296_s1, 32 }
  0x1d   :  { %322 = vset.pattern.permute.xlu0 %v408_v39  ;;  %p379_p10 = scmp.ne.s32.totalorder %s296_s1, %s378_s19  ;;  %p383_p11 = scmp.lt.s32.totalorder %s296_s1, %s296_s1 }
  0x1e   :  { %p384_p12 = scmp.lt.s32.totalorder %s382_s20, %s378_s19 }
  0x1f   :  { %66 = vmax.xlane.f32.xlu0 %v65_v3 }
  0x20   :  { %p385_p13 = por %p384_p12, %p383_p11 }
  0x22   :  { %v111_v29 = vld [vmem:[#allocation6] sm:$0x1]  ;;  %p386_p0 = pnand %p385_p13, %p379_p10 }
  0x23   :  { %v85_v60 = vld [vmem:[#allocation4] sm:$0x1]  ;;  %v98_v61 = vld [vmem:[#allocation5] sm:$0x1] }
  0xa4   :  { %v56_v4 = vpop.xlane.xlu0 %55 }
  0xa5   :  { %v57_v5 = vsub.f32 %v51_v0, %v56_v4 }
  0xa7   :  { %v58_v6 = vmul.f32 1.442695, %v57_v5 }
  0xa8   :  { %v67_v7 = vpop.xlane.xlu0 %66 }
  0xa9   :  { %324 = vpow2.f32 %v58_v6  ;;  %v68_v8 = vsub.f32 %v52_v1, %v67_v7 }
  0xab   :  { %v69_v9 = vmul.f32 1.442695, %v68_v8 }
  0xad   :  { %326 = vpow2.f32 %v69_v9 }
  0xb6   :  { %v325_v10 = vpop.eup %324 }
  0xb7   :  { %v60_v11 = vsel %vm53_vm0, %v325_v10, 0.0 }
  0xb8   :  { %61 = vadd.xlane.f32.xlu1 %v60_v11 }
  0xba   :  { %v327_v12 = vpop.eup %326 }
  0xbb   :  { %v71_v13 = vsel %vm53_vm0, %v327_v12, 0.0 }
  0xbc   :  { %72 = vadd.xlane.f32.xlu1 %v71_v13 }
 0x141   :  { %v62_v15 = vpop.xlane.xlu1 %61 }
 0x142   :  { %328 = vrcp.f32 %v62_v15 }
 0x145   :  { %v73_v16 = vpop.xlane.xlu1 %72 }
 0x146   :  { %330 = vrcp.f32 %v73_v16 }
 0x14f   :  { %v329_v17 = vpop.eup %328 }
 0x150   :  { %v64_v18 = vmul.f32 %v329_v17, %v325_v10 }
 0x152   :  { %v112_v19 = vsel %vm53_vm0, %v64_v18, 0.0  ;;  %123 = vst.msk [vmem:[#allocation2] sm:$0xff] %vm53_vm0, %v64_v18 }
 0x153   :  { %v331_v20 = vpop.eup %330  ;;  %v113_v21 = vrot.slane %v112_v19, 4 }
 0x154   :  { %v75_v22 = vmul.f32 %v331_v20, %v327_v12 }
 0x155   :  { %v114_v23 = vadd.f32 %v113_v21, %v112_v19 }
 0x156   :  { %v79_v24 = vmul.f32 %v75_v22, %v64_v18 }
 0x157   :  { %v115_v25 = vrot.slane %v114_v23, 2 }
 0x158   :  { %v80_v26 = vsel %vm53_vm0, %v79_v24, 0.0 }
 0x159   :  { %v116_v27 = vadd.f32 %v115_v25, %v114_v23  ;;  %81 = vadd.xlane.f32.xlu0 %v80_v26  ;;  %v144_v42 = vld [vmem:[#allocation2] sm:$0xff] }
 0x15b   :  { %v117_v28 = vrot.slane %v116_v27, 1 }
 0x15d   :  { %v118_v30 = vadd.f32 %v117_v28, %v116_v27  ;;  %v240_v28 = vlaneseq }
 0x15f   :  { %v119_v31 = vadd.f32 %v118_v30, %v111_v29  ;;  %v249_v29 = vshrl.u32 %v240_v28, 7 }
 0x161   :  { %121 = vst.msk [vmem:[#allocation6] sm:$0x1] %vm43_vm1, %v119_v31  ;;  %v250_v31 = vsub.s32 0, %v249_v29 }
 0x168   :  { %v134_v32 = vld [vmem:[#allocation6] sm:$0x1] }
 0x169   :  { %v135_v33 = vmul.f32 0.125, %v134_v32  ;;  %v241_v32 = vand.u32 127, %v240_v28 }
 0x16b   :  { %v136_v34 = vmax.f32 %v135_v33, 1e-08  ;;  %vm253_vm5 = vcmp.eq.s32.totalorder %v241_v32, 1  ;;  %vm242_vm6 = vcmp.eq.s32.totalorder %v241_v32, 0  ;;  %vm265_vm7 = vcmp.eq.s32.totalorder %v241_v32, 2 }
 0x16c   :  { %vm268_vm8 = vcmp.eq.s32.totalorder %v241_v32, 3  ;;  %vm280_vm9 = vcmp.eq.s32.totalorder %v241_v32, 4 }
 0x16d   :  { %332 = vlog2.f32 %v136_v34 }
 0x17a   :  { %v333_v35 = vpop.eup %332 }
 0x17b   :  { %v138_v36 = vmul.f32 0.6931472, %v333_v35 }
 0x17d   :  { %v139_v37 = vmul.f32 %v138_v36, %v136_v34 }
 0x17f   :  { %v140_v38 = vsel %vm43_vm1, %v139_v37, 0.0 }
 0x180   :  { %141 = vadd.xlane.f32.xlu1 %v140_v38 }
 0x1e2   :  { %v82_v40 = vpop.xlane.xlu0 %81 }
 0x1e3   :  { %334 = vlog2.f32 %v82_v40  ;;  %127 = vst.msk [vmem:[#allocation3] sm:$0xff] %vm126_vm4, %v82_v40  ;;  %v99_v46 = vmax.f32 %v82_v40, 1e-08 }
 0x1ea   :  { %v145_v41 = vld [vmem:[#allocation3] sm:$0xff] }
 0x1eb   :  { %310 = vmatpush3.msra.mxu0 %v145_v41 }
 0x1ec   :  { %311 = vmatprep.subr.mxu0 %v406_v14 }
 0x1ed   :  { %312 = vmatpush3.msra.mxu0 %v145_v41 }
 0x1ee   :  { %314 = vmatmul.mubr.msk.f32.vlgmr.msra.gmra.mxu0 %vm53_vm0, %v144_v42 }
 0x1f0   :  { %v335_v43 = vpop.eup %334 }
 0x1f1   :  { %v84_v44 = vmul.f32 0.6931472, %v335_v43 }
 0x1f3   :  { %v86_v45 = vmax.f32 %v84_v44, -100.0  ;;  %v100_v47 = vmax.f32 %v84_v44, 1e-08 }
 0x1f5   :  { %v87_v48 = vsub.f32 0.0, %v86_v45  ;;  %v101_v49 = vmul.f32 %v100_v47, %v99_v46 }
 0x1f7   :  { %v89_v50 = vrot.slane %v87_v48, 4  ;;  %v103_v51 = vrot.slane %v101_v49, 4 }
 0x1f9   :  { %v90_v52 = vadd.f32 %v89_v50, %v87_v48  ;;  %v104_v53 = vadd.f32 %v103_v51, %v101_v49 }
 0x1fb   :  { %v91_v54 = vrot.slane %v90_v52, 2  ;;  %v105_v55 = vrot.slane %v104_v53, 2 }
 0x1fd   :  { %v92_v56 = vadd.f32 %v91_v54, %v90_v52  ;;  %v106_v57 = vadd.f32 %v105_v55, %v104_v53 }
 0x1ff   :  { %v93_v58 = vrot.slane %v92_v56, 1  ;;  %v107_v59 = vrot.slane %v106_v57, 1 }
 0x201   :  { %v94_v62 = vadd.f32 %v93_v58, %v92_v56  ;;  %v108_v63 = vadd.f32 %v107_v59, %v106_v57 }
 0x203   :  { %v95_v0 = vadd.f32 %v94_v62, %v85_v60  ;;  %v109_v1 = vadd.f32 %v108_v63, %v98_v61 }
 0x205   :  { %97 = vst.msk [vmem:[#allocation4] sm:$0x1] %vm40_vm2, %v95_v0  ;;  %110 = vst.msk [vmem:[#allocation5] sm:$0x1] %vm40_vm2, %v109_v1 }
 0x209   :  { %v142_v2 = vpop.xlane.xlu1 %141 }
 0x20a   :  { %v143_v3 = vsub.f32 0.0, %v142_v2 }
 0x20c   :  { %v234_v4 = vmul.f32 2.0, %v143_v3  ;;  %v131_v5 = vld [vmem:[#allocation4] sm:$0x1]  ;;  %v133_v6 = vld [vmem:[#allocation5] sm:$0x1]  ;;  %v266_v41 = vsel %vm265_vm7, %v143_v3, 0.0 }
 0x20d   :  { %v132_v7 = vmul.f32 0.125, %v131_v5  ;;  %v236_v9 = vmul.f32 0.015625, %v133_v6 }
 0x20f   :  { %256 = vperm.xlu1 %323, %v132_v7   ;;  %v235_v8 = vsub.f32 %v132_v7, %v234_v4 }
 0x211   :  { %v237_v10 = vadd.f32 %v236_v9, %v235_v8 }
 0x213   :  { %271 = vperm.xlu1 %323, %v133_v6  }
 0x28a   :  { %v257_v30 = vpop.permute.xlu1 %256 }
 0x28b   :  { %v262_v33 = vrot.slane %v257_v30, %v250_v31 }
 0x28d   :  { %v263_v37 = vsel %vm253_vm5, %v262_v33, 0.0 }
 0x28e   :  { %v272_v34 = vpop.permute.xlu1 %271 }
 0x28f   :  { %v277_v38 = vrot.slane %v272_v34, %v250_v31 }
 0x291   :  { %v278_v44 = vsel %vm268_vm8, %v277_v38, 0.0 }
 0x2ae   :  { %v216_v11 = vpop.f32.mrf.mxu0 }
 0x2af   :  { %336 = vlog2.f32 %v216_v11  ;;  %v222_v15 = vmax.f32 %v216_v11, 1e-08 }
 0x2b0   :  { %v315_v12 = vpop.f32.mrf.mxu0 }
 0x2bc   :  { %v337_v13 = vpop.eup %336 }
 0x2bd   :  { %v221_v14 = vmul.f32 0.6931472, %v337_v13 }
 0x2bf   :  { %v223_v16 = vmax.f32 %v221_v14, 1e-08 }
 0x2c1   :  { %v224_v17 = vmul.f32 %v223_v16, %v222_v15 }
 0x2c3   :  { %v226_v18 = vsel %vm126_vm4, %v224_v17, 0.0 }
 0x2c4   :  { %v227_v19 = vrot.slane %v226_v18, 4 }
 0x2c6   :  { %v228_v20 = vadd.f32 %v227_v19, %v226_v18 }
 0x2c8   :  { %v229_v21 = vrot.slane %v228_v20, 2 }
 0x2ca   :  { %v230_v22 = vadd.f32 %v229_v21, %v228_v20 }
 0x2cc   :  { %v231_v23 = vrot.slane %v230_v22, 1 }
 0x2ce   :  { %v232_v24 = vadd.f32 %v231_v23, %v230_v22 }
 0x2d0   :  { %v233_v25 = vmul.f32 0.0625, %v232_v24 }
 0x2d2   :  { %283 = vperm.xlu1 %323, %v233_v25   ;;  %v238_v26 = vmul.f32 0.125, %v233_v25 }
 0x2d4   :  { %v239_v27 = vsub.f32 %v237_v10, %v238_v26 }
 0x2d6   :  { %245 = vperm.xlu0 %322, %v239_v27  }
 0x34d   :  { %v284_v42 = vpop.permute.xlu1 %283 }
 0x34e   :  { %v286_v46 = vsel %vm280_vm9, %v284_v42, 0.0 }
 0x351   :  { %v246_v35 = vpop.permute.xlu0 %245 }
 0x352   :  { %v251_v36 = vrot.slane %v246_v35, %v250_v31 }
 0x354   :  { %v252_v39 = vsel %vm242_vm6, %v251_v36, 0.0 }
 0x355   :  { %v264_v40 = vadd.f32 %v263_v37, %v252_v39 }
 0x357   :  { %v267_v43 = vadd.f32 %v266_v41, %v264_v40 }
 0x359   :  { %v279_v45 = vadd.f32 %v278_v44, %v267_v43 }
 0x35b   :  { %v287_v47 = vadd.f32 %v286_v46, %v279_v45 }
 0x35d   :  { %288 = vst [vmem:[#allocation12] sm:$0x1] %v287_v47 }
 0x35e   :  { %389 = shalt.err (!%p386_p0)
}
 0x35f   :  { %298 = dma.vmem_to_hbm [thread:$0]  %s296_s1, 16, %s453_s2, [#allocation9]  }
 0x360   :  { %402 = dma.done.wait [#allocation9], 16  }
 0x361   :  { %403 = vsyncadd [#allocation9], 4294967280 }
 0x362   :  { %302 = vsyncpa [#allocation8], 1 }
 0x363   :  { %303 = vsyncpa [#allocation11], 1 }
 0x364   :  { %304 = vsyncpa [#allocation9], 1 }

</bundles_post_ra>
